<compile_context>
chip_gen: v6e
topology: v6e:2x2x1
jax: 0.10.0
libtpu: 0.0.40
codegen_flags: <defaults>
</compile_context>

<pallas_src>
import jax
import jax.numpy as jnp
from jax.experimental import pallas as pl
from jax.experimental.pallas import tpu as pltpu

_HIDDEN = 64
_HIDDEN_LANES = 128       # hidden activations kept lane-dense at 128 lanes
_DEFAULT_MAX_TILE = 2048  # batch rows per kernel invocation / grid step


def _round_up(x, m):
    return (x + m - 1) // m * m


def _layout(input_size, output_size):
    """Row offsets of the weight sections inside the packed weight blob."""
    out_w = _round_up(max(output_size, 1), 128)
    width = max(_HIDDEN_LANES, out_w)              # lane-dense blob width
    r_w1 = 0
    r_w2 = _round_up(max(input_size, 1), 16)       # 16-row aligned (bf16 sublane tile)
    r_w3 = r_w2 + _HIDDEN_LANES
    rows = r_w3 + _HIDDEN_LANES
    return dict(width=width, rows=rows, r_w1=r_w1, r_w2=r_w2, r_w3=r_w3)


def pack_params(params, *, weight_dtype=jnp.bfloat16):
    """Pack w1/w2/w3 into one lane-dense blob (weight_dtype) and b1/b2/b3 into a
    tiny separate f32 blob (biases are never quantized)."""
    w1 = jnp.asarray(params["w1"], jnp.float32)
    b1 = jnp.asarray(params["b1"], jnp.float32)
    w2 = jnp.asarray(params["w2"], jnp.float32)
    b2 = jnp.asarray(params["b2"], jnp.float32)
    w3 = jnp.asarray(params["w3"], jnp.float32)
    b3 = jnp.asarray(params["b3"], jnp.float32)

    input_size = w1.shape[0]
    output_size = w3.shape[1]
    lay = _layout(input_size, output_size)
    rows, width = lay["rows"], lay["width"]

    wblob = jnp.zeros((rows, width), jnp.float32)
    wblob = wblob.at[lay["r_w1"]:lay["r_w1"] + input_size, :_HIDDEN].set(w1)
    wblob = wblob.at[lay["r_w2"]:lay["r_w2"] + _HIDDEN, :_HIDDEN].set(w2)
    wblob = wblob.at[lay["r_w3"]:lay["r_w3"] + _HIDDEN, :output_size].set(w3)

    bblob = jnp.zeros((8, width), jnp.float32)     # row 0=b1, 1=b2, 2=b3
    bblob = bblob.at[0, :_HIDDEN].set(b1)
    bblob = bblob.at[1, :_HIDDEN].set(b2)
    bblob = bblob.at[2, :output_size].set(b3)

    return {
        "weights": wblob.astype(weight_dtype),
        "biases": bblob,
        "input_size": input_size,
        "output_size": output_size,
        "layout": lay,
    }


def _make_mlp_kernel(lay, input_size, compute_dtype):
    width = lay["width"]
    r_w1, r_w2, r_w3 = lay["r_w1"], lay["r_w2"], lay["r_w3"]
    HL = _HIDDEN_LANES

    def kernel(x_ref, w_ref, b_ref, o_ref):
        # MXU inputs in compute_dtype (bf16 default), f32 accumulation.
        # Bias-add / ReLU epilogue stays f32 (biases are stored f32).
        x = x_ref[...].astype(compute_dtype)

        w1 = w_ref[pl.ds(r_w1, input_size), pl.ds(0, HL)]
        b1 = b_ref[pl.ds(0, 1), pl.ds(0, HL)]
        h = jnp.dot(x, w1, preferred_element_type=jnp.float32) + b1
        h = jnp.maximum(h, 0.0)

        w2 = w_ref[pl.ds(r_w2, HL), pl.ds(0, HL)]
        b2 = b_ref[pl.ds(1, 1), pl.ds(0, HL)]
        h = jnp.dot(h.astype(compute_dtype), w2,
                    preferred_element_type=jnp.float32) + b2
        h = jnp.maximum(h, 0.0)

        w3 = w_ref[pl.ds(r_w3, HL), :]
        b3 = b_ref[pl.ds(2, 1), :]
        out = jnp.dot(h.astype(compute_dtype), w3,
                      preferred_element_type=jnp.float32) + b3
        o_ref[...] = out.astype(o_ref.dtype)

    return kernel


def goal_dqn_forward(state, packed, *, out_dtype=jnp.float32,
                     max_batch_tile=_DEFAULT_MAX_TILE):
    """Forward pass of GoalDQNNetwork.

    state : (B, input_size), (input_size,), or (1, 1, input_size) (squeezed like
            the PyTorch `if len(state.shape) == 3` branch).
    packed: result of pack_params(...).
    """
    wblob = packed["weights"]
    bblob = packed["biases"]
    lay = packed["layout"]
    input_size = packed["input_size"]
    output_size = packed["output_size"]
    width = lay["width"]

    state = jnp.asarray(state)
    squeeze_out = False
    if state.ndim == 3:
        # mirrors PyTorch: state.squeeze(0).squeeze(0)  (only (1,1,input) supported)
        state = jnp.squeeze(jnp.squeeze(state, axis=0), axis=0)
    if state.ndim == 1:
        state = state[None, :]
        squeeze_out = True
    assert state.ndim == 2 and state.shape[1] == input_size, state.shape

    B = state.shape[0]
    kernel = _make_mlp_kernel(lay, input_size, wblob.dtype)
    out_shape = jax.ShapeDtypeStruct((B, width), out_dtype)

    if B <= max_batch_tile:
        # Tiny/moderate batch: single invocation, whole arrays resident in VMEM.
        out = pl.pallas_call(kernel, out_shape=out_shape)(state, wblob, bblob)
    else:
        # Replay-buffer path: tile the batch with an even number of grid steps
        # (balances v7x's 2 TensorCores); Pallas handles the ragged last block,
        # so there is no wrapper-side pad/slice HBM round trip.
        nb = pl.cdiv(B, max_batch_tile)
        if nb % 2:
            nb += 1
        tb = _round_up(pl.cdiv(B, nb), 8)
        n_steps = pl.cdiv(B, tb)
        out = pl.pallas_call(
            kernel,
            out_shape=out_shape,
            grid=(n_steps,),
            in_specs=[
                pl.BlockSpec((tb, input_size), lambda i: (i, 0)),
                # Constant index_map -> param blobs stay VMEM-resident across steps.
                pl.BlockSpec(wblob.shape, lambda i: (0, 0)),
                pl.BlockSpec(bblob.shape, lambda i: (0, 0)),
            ],
            out_specs=pl.BlockSpec((tb, width), lambda i: (i, 0)),
            compiler_params=pltpu.CompilerParams(
                dimension_semantics=("parallel",),
            ),
        )(state, wblob, bblob)

    out = out[:, :output_size]
    if squeeze_out:
        out = out[0]
    return out


def init_params(key, input_size, output_size):
    """Deterministic synthetic init (Kaiming-uniform-ish scale, like torch default)."""
    k1, k2, k3, k4, k5, k6 = jax.random.split(key, 6)

    def uni(k, shape, fan_in):
        bound = 1.0 / jnp.sqrt(fan_in)
        return jax.random.uniform(k, shape, jnp.float32, -bound, bound)

    return {
        "w1": uni(k1, (input_size, _HIDDEN), input_size),
        "b1": uni(k2, (_HIDDEN,), input_size),
        "w2": uni(k3, (_HIDDEN, _HIDDEN), _HIDDEN),
        "b2": uni(k4, (_HIDDEN,), _HIDDEN),
        "w3": uni(k5, (_HIDDEN, output_size), _HIDDEN),
        "b3": uni(k6, (output_size,), _HIDDEN),
    }


def _reference(state, params, compute_dtype):
    """Plain-JAX reference mirroring the kernel's dtype handling
    (weights/activations in compute_dtype, f32 accumulation, f32 biases)."""
    state = jnp.asarray(state, jnp.float32)
    if state.ndim == 3:
        state = jnp.squeeze(jnp.squeeze(state, axis=0), axis=0)
    c = lambda a: jnp.asarray(a).astype(compute_dtype)
    h = jnp.maximum(
        jnp.dot(c(state), c(params["w1"]), preferred_element_type=jnp.float32)
        + jnp.asarray(params["b1"], jnp.float32), 0.0)
    h = jnp.maximum(
        jnp.dot(c(h), c(params["w2"]), preferred_element_type=jnp.float32)
        + jnp.asarray(params["b2"], jnp.float32), 0.0)
    return (jnp.dot(c(h), c(params["w3"]), preferred_element_type=jnp.float32)
            + jnp.asarray(params["b3"], jnp.float32))


if __name__ == "__main__":
    key = jax.random.PRNGKey(0)
    k_params, k_state, k_big = jax.random.split(key, 3)

    input_size = 32
    output_size = 8
    batch = 2

    params = init_params(k_params, input_size, output_size)
    x = jax.random.normal(k_state, (batch, input_size), jnp.float32)

    # --- default path: bf16-stored weights, f32 biases, f32 accumulation ---
    packed_bf16 = pack_params(params)  # weight_dtype defaults to bf16
    out_bf = jax.block_until_ready(goal_dqn_forward(x, packed_bf16))
    ref_bf = _reference(x, params, jnp.bfloat16)
    assert out_bf.shape == (batch, output_size), out_bf.shape
    assert jnp.allclose(out_bf, ref_bf, atol=3e-2, rtol=3e-2), "bf16 mismatch"

    # --- f32 packed weights (debug/validation mode) -------------------------
    packed_f32 = pack_params(params, weight_dtype=jnp.float32)
    out_f32 = jax.block_until_ready(goal_dqn_forward(x, packed_f32))
    ref_f32 = _reference(x, params, jnp.float32)
    assert jnp.allclose(out_f32, ref_f32, atol=1e-3, rtol=1e-3), "f32 mismatch"

    # --- 3-D squeeze branch from the PyTorch forward -------------------------
    x3 = x[0][None, None, :]  # (1, 1, input_size)
    out3 = jax.block_until_ready(goal_dqn_forward(x3, packed_f32))
    assert out3.shape == (output_size,), out3.shape
    assert jnp.allclose(out3, ref_f32[0], atol=1e-3, rtol=1e-3)

    # --- batched (replay-buffer) gridded path, even grid split --------------
    xb = jax.random.normal(k_big, (512, input_size), jnp.float32)
    outb = jax.block_until_ready(
        goal_dqn_forward(xb, packed_f32, max_batch_tile=128))
    refb = _reference(xb, params, jnp.float32)
    assert outb.shape == (512, output_size), outb.shape
    assert jnp.allclose(outb, refb, atol=1e-3, rtol=1e-3), "batched mismatch"

    # --- ragged last block (no wrapper-side batch padding) -------------------
    xr = xb[:500]
    outr = jax.block_until_ready(
        goal_dqn_forward(xr, packed_f32, max_batch_tile=128))
    assert outr.shape == (500, output_size), outr.shape
    assert jnp.allclose(outr, refb[:500], atol=1e-3, rtol=1e-3), "ragged mismatch"

    print("KERNEL_OK")
</pallas_src>

<mosaic_0001>
module attributes {stable_mosaic.version = 11 : i64} {
  func.func @kernel(%arg0: memref<2x32xf32, #tpu.memory_space<vmem>>, %arg1: memref<288x128xbf16, #tpu.memory_space<vmem>>, %arg2: memref<8x128xf32, #tpu.memory_space<vmem>>, %arg3: memref<2x128xf32, #tpu.memory_space<vmem>>) attributes {dimension_semantics = [], scalar_prefetch = 0 : i64, scratch_operands = 0 : i64, tpu.core_type = #tpu.core_type<tc>} {
    %c0 = arith.constant 0 : index
    %c0_0 = arith.constant 0 : index
    %0 = vector.load %arg0[%c0, %c0_0] : memref<2x32xf32, #tpu.memory_space<vmem>>, vector<2x32xf32>
    %1 = arith.truncf %0 : vector<2x32xf32> to vector<2x32xbf16>
    %c0_1 = arith.constant 0 : index
    %c0_2 = arith.constant 0 : index
    %2 = vector.load %arg1[%c0_1, %c0_2] : memref<288x128xbf16, #tpu.memory_space<vmem>>, vector<32x128xbf16>
    %c0_3 = arith.constant 0 : index
    %c0_4 = arith.constant 0 : index
    %3 = vector.load %arg2[%c0_3, %c0_4] : memref<8x128xf32, #tpu.memory_space<vmem>>, vector<1x128xf32>
    %cst = arith.constant dense<0.000000e+00> : vector<2x128xf32>
    %4 = tpu.matmul %1, %2, %cst {dimension_numbers = #tpu.dot_dimension_numbers<[1], [0], [0], [1], [0, 0, 1, 1], [], []>} : vector<2x32xbf16>, vector<32x128xbf16>, vector<2x128xf32> -> vector<2x128xf32>
    %5 = vector.broadcast %3 : vector<1x128xf32> to vector<2x128xf32>
    %6 = arith.addf %4, %5 : vector<2x128xf32>
    %cst_5 = arith.constant 0.000000e+00 : f32
    %7 = vector.broadcast %cst_5 : f32 to vector<2x128xf32>
    %8 = arith.maximumf %6, %7 : vector<2x128xf32>
    %c32 = arith.constant 32 : index
    %c0_6 = arith.constant 0 : index
    %9 = vector.load %arg1[%c32, %c0_6] : memref<288x128xbf16, #tpu.memory_space<vmem>>, vector<128x128xbf16>
    %c1 = arith.constant 1 : index
    %c0_7 = arith.constant 0 : index
    %10 = vector.load %arg2[%c1, %c0_7] : memref<8x128xf32, #tpu.memory_space<vmem>>, vector<1x128xf32>
    %11 = arith.truncf %8 : vector<2x128xf32> to vector<2x128xbf16>
    %cst_8 = arith.constant dense<0.000000e+00> : vector<2x128xf32>
    %12 = tpu.matmul %11, %9, %cst_8 {dimension_numbers = #tpu.dot_dimension_numbers<[1], [0], [0], [1], [0, 0, 1, 1], [], []>} : vector<2x128xbf16>, vector<128x128xbf16>, vector<2x128xf32> -> vector<2x128xf32>
    %13 = vector.broadcast %10 : vector<1x128xf32> to vector<2x128xf32>
    %14 = arith.addf %12, %13 : vector<2x128xf32>
    %cst_9 = arith.constant 0.000000e+00 : f32
    %15 = vector.broadcast %cst_9 : f32 to vector<2x128xf32>
    %16 = arith.maximumf %14, %15 : vector<2x128xf32>
    %c160 = arith.constant 160 : index
    %c0_10 = arith.constant 0 : index
    %17 = vector.load %arg1[%c160, %c0_10] : memref<288x128xbf16, #tpu.memory_space<vmem>>, vector<128x128xbf16>
    %c2 = arith.constant 2 : index
    %c0_11 = arith.constant 0 : index
    %18 = vector.load %arg2[%c2, %c0_11] : memref<8x128xf32, #tpu.memory_space<vmem>>, vector<1x128xf32>
    %19 = arith.truncf %16 : vector<2x128xf32> to vector<2x128xbf16>
    %cst_12 = arith.constant dense<0.000000e+00> : vector<2x128xf32>
    %20 = tpu.matmul %19, %17, %cst_12 {dimension_numbers = #tpu.dot_dimension_numbers<[1], [0], [0], [1], [0, 0, 1, 1], [], []>} : vector<2x128xbf16>, vector<128x128xbf16>, vector<2x128xf32> -> vector<2x128xf32>
    %21 = vector.broadcast %18 : vector<1x128xf32> to vector<2x128xf32>
    %22 = arith.addf %20, %21 : vector<2x128xf32>
    %c0_13 = arith.constant 0 : index
    %c0_14 = arith.constant 0 : index
    %23 = vector.load %arg3[%c0_13, %c0_14] : memref<2x128xf32, #tpu.memory_space<vmem>>, vector<2x128xf32>
    tpu.vector_store %arg3[%c0_13, %c0_14], %22 {strides = array<i32>} : memref<2x128xf32, #tpu.memory_space<vmem>>, vector<2x128xf32>,
    return
  }
}

</mosaic_0001>

<bundles_post_ra>
// kernel: tpu_custom_call.1
= control target key start
LH: loop header
LB: loop body
LE: loop exit
PB: predicated region body
PF: predicated region fallthrough
CT: control target
= control target key end

     0   :  { %8 = vsyncpa [#allocation3], 0  ;;  %s626_s0 = inlined_call_operand.hbm [shape: f32[2,32], index: 0, kind: input, shape index: {}]   ;;  %s627_s1 = inlined_call_operand.hbm [shape: bf16[288,128], index: 1, kind: input, shape index: {}]   ;;  %s628_s2 = inlined_call_operand.hbm [shape: f32[8,128], index: 2, kind: input, shape index: {}]   ;;  %s629_s3 = inlined_call_operand.hbm [shape: f32[2,128], index: 3, kind: output, shape index: {}]  }
   0x1   :  { %9 = vsyncpa [#allocation6], 0 }
   0x2   :  { %10 = vsyncpa [#allocation4], 0  ;;  %s562_s12 = smov [#allocation5]  }
   0x3   :  { %s26_s13 = sshll.u32 %s562_s12, 4  ;;  %s27_s13 = int_to_ptr.vmem [resolvable:$true] %s26_s13 }
   0x4   :  { %s484_s14 = scalar_lea.vmem %s27_s13, 2304  ;;  %p489_p1 = scmp.lt.s32.totalorder %s27_s13, %s27_s13 }
   0x5   :  { %p485_p0 = scmp.ne.s32.totalorder %s27_s13, %s484_s14  ;;  %p490_p2 = scmp.lt.s32.totalorder %s484_s14, %s484_s14 }
   0x7   :  { %p491_p3 = por %p490_p2, %p489_p1 }
   0x9   :  { %p492_p4 = pnand %p491_p3, %p485_p0 }
   0xb   :  { %495 = shalt.err (!%p492_p4)
}
   0xc   :  { %s563_s15 = smov 64   ;;  %s564_s16 = smov 4  }
   0xd   :  { %32 = dma.hbm_to_vmem [thread:$0]  %s627_s1, 2304, %s27_s13, [#allocation6], %s563_s15, %s563_s15, %s564_s16  }
   0xe   :  { %s565_s19 = smov [#allocation2]   ;;  %s566_s21 = smov [#allocation7]  }
   0xf   :  { %s17_s20 = sshll.u32 %s565_s19, 4  ;;  %s39_s22 = sshll.u32 %s566_s21, 4  ;;  %s18_s20 = int_to_ptr.vmem [resolvable:$true] %s17_s20  ;;  %s40_s22 = int_to_ptr.vmem [resolvable:$true] %s39_s22 }
  0x10   :  { %s504_s23 = scalar_lea.vmem %s18_s20, 32  ;;  %p509_p6 = scmp.lt.s32.totalorder %s18_s20, %s18_s20 }
  0x11   :  { %p505_p5 = scmp.ne.s32.totalorder %s18_s20, %s504_s23  ;;  %p510_p7 = scmp.lt.s32.totalorder %s504_s23, %s504_s23 }
  0x13   :  { %p511_p8 = por %p510_p7, %p509_p6 }
  0x15   :  { %p512_p9 = pnand %p511_p8, %p505_p5 }
  0x17   :  { %515 = shalt.err (!%p512_p9)
}
  0x18   :  { %20 = dma.hbm_to_vmem [thread:$0]  %s626_s0, 32, %s18_s20, [#allocation3]  }
  0x19   :  { %s524_s26 = scalar_lea.vmem %s40_s22, 128  ;;  %p529_p11 = scmp.lt.s32.totalorder %s40_s22, %s40_s22 }
  0x1a   :  { %p525_p10 = scmp.ne.s32.totalorder %s40_s22, %s524_s26  ;;  %p530_p12 = scmp.lt.s32.totalorder %s524_s26, %s524_s26 }
  0x1c   :  { %p531_p13 = por %p530_p12, %p529_p11 }
  0x1e   :  { %p532_p0 = pnand %p531_p13, %p525_p10 }
  0x20   :  { %535 = shalt.err (!%p532_p0)
}
  0x21   :  { %42 = dma.hbm_to_vmem [thread:$0]  %s628_s2, 128, %s40_s22, [#allocation6]  }
  0x22   :  { %556 = dma.done.wait [#allocation3], 32  }
  0x23   :  { %557 = vsyncadd [#allocation3], 4294967264 }
  0x24   :  { %558 = dma.done.wait [#allocation6], 2432  }
  0x25   :  { %559 = vsyncadd [#allocation6], 4294964864  ;;  %v567_v0 = vmov 0.0   ;;  %vm568_vm0 = vmmov 0   ;;  %v458_v1 = vld [vmem:[#allocation5 + $0x8] sm:$0xff]   ;;  %v459_v2 = vld [vmem:[#allocation5] sm:$0xff]  }
  0x26   :  { %402 = vmatprep.subr.bf16.mxu0 %v567_v0  ;;  %406 = vmatprep.mubr.msk.bf16.mxu0 %vm568_vm0, %v567_v0  ;;  %v53_v3 = vld [vmem:[#allocation2] sm:$0x3]  ;;  %v460_v4 = vld [vmem:[#allocation5 + $0x48] sm:$0xff]   ;;  %v461_v6 = vld [vmem:[#allocation5 + $0x40] sm:$0xff]   ;;  %vm76_vm1 = vcmask 261120   ;;  %s569_s0 = smov [#allocation8]  }
  0x27   :  { %410 = vmatprep.subr.bf16.mxu1 %v567_v0  ;;  %426 = vmatprep.mubr.msk.bf16.mxu1 %vm568_vm0, %v567_v0  ;;  %v54_v5 = vpack.c.bf16 %v53_v3, %v53_v3  ;;  %v462_v7 = vld [vmem:[#allocation5 + $0x38] sm:$0xff]   ;;  %v463_v8 = vld [vmem:[#allocation5 + $0x30] sm:$0xff]   ;;  %v464_v9 = vld [vmem:[#allocation5 + $0x28] sm:$0xff]   ;;  %s349_s2 = sshll.u32 %s569_s0, 4  ;;  %s350_s2 = int_to_ptr.vmem [resolvable:$true] %s349_s2 }
  0x28   :  { %403 = vmatpush3.bf16.msra.mxu0 %v458_v1  ;;  %411 = vmatpush3.bf16.msra.mxu1 %v460_v4  ;;  %v465_v10 = vld [vmem:[#allocation5 + $0x20] sm:$0xff]   ;;  %v466_v11 = vld [vmem:[#allocation5 + $0x18] sm:$0xff]   ;;  %v467_v12 = vld [vmem:[#allocation5 + $0x10] sm:$0xff]   ;;  %s536_s28 = scalar_lea.vmem %s350_s2, 32  ;;  %p541_p2 = scmp.lt.s32.totalorder %s350_s2, %s350_s2 }
  0x29   :  { %404 = vmatprep.subr.bf16.mxu0 %v567_v0  ;;  %412 = vmatprep.subr.bf16.mxu1 %v567_v0  ;;  %v468_v13 = vld [vmem:[#allocation5 + $0x88] sm:$0xff]   ;;  %v469_v14 = vld [vmem:[#allocation5 + $0x80] sm:$0xff]   ;;  %v470_v15 = vld [vmem:[#allocation5 + $0x78] sm:$0xff]   ;;  %p537_p1 = scmp.ne.s32.totalorder %s350_s2, %s536_s28  ;;  %p542_p3 = scmp.lt.s32.totalorder %s536_s28, %s536_s28 }
  0x2a   :  { %v471_v16 = vld [vmem:[#allocation5 + $0x70] sm:$0xff]   ;;  %v472_v17 = vld [vmem:[#allocation5 + $0x68] sm:$0xff]   ;;  %v473_v18 = vld [vmem:[#allocation5 + $0x60] sm:$0xff]  }
  0x2b   :  { %v359_v19 = vld [vmem:[#allocation7] ss:$0 sm:$0xff]  ;;  %v474_v27 = vld [vmem:[#allocation5 + $0x58] sm:$0xff]   ;;  %v363_v29 = vld [vmem:[#allocation7 + $0x1] ss:$0 sm:$0xff]  ;;  %p543_p4 = por %p542_p3, %p541_p2 }
  0x2c   :  { %405 = vmatpush3.bf16.msra.mxu0 %v459_v2  ;;  %413 = vmatpush3.bf16.msra.mxu1 %v461_v6  ;;  %v475_v28 = vld [vmem:[#allocation5 + $0x50] sm:$0xff]  }
  0x2d   :  { %430 = vmatprep.subr.bf16.mxu0 %v567_v0  ;;  %414 = vmatprep.subr.bf16.mxu1 %v567_v0  ;;  %v372_v37 = vld [vmem:[#allocation7 + $0x2] ss:$0 sm:$0xff]  ;;  %p544_p5 = pnand %p543_p4, %p537_p1 }
  0x2f   :  { %407 = vmatmul.mubr.msk.bf16.vlgmr.msra.gmra.mxu0 %vm76_vm1, %v54_v5 }
  0x30   :  { %446 = vmatprep.mubr.msk.bf16.mxu0 %vm568_vm0, %v567_v0  ;;  %415 = vmatpush3.bf16.msra.mxu1 %v462_v7 }
  0x31   :  { %416 = vmatprep.subr.bf16.mxu1 %v567_v0  ;;  %431 = vmatpush3.bf16.msra.mxu0 %v468_v13 }
  0x32   :  { %432 = vmatprep.subr.bf16.mxu0 %v567_v0 }
  0x34   :  { %417 = vmatpush3.bf16.msra.mxu1 %v463_v8 }
  0x35   :  { %418 = vmatprep.subr.bf16.mxu1 %v567_v0  ;;  %433 = vmatpush3.bf16.msra.mxu0 %v469_v14 }
  0x36   :  { %434 = vmatprep.subr.bf16.mxu0 %v567_v0 }
  0x38   :  { %419 = vmatpush3.bf16.msra.mxu1 %v464_v9 }
  0x39   :  { %420 = vmatprep.subr.bf16.mxu1 %v567_v0  ;;  %435 = vmatpush3.bf16.msra.mxu0 %v470_v15 }
  0x3a   :  { %436 = vmatprep.subr.bf16.mxu0 %v567_v0 }
  0x3c   :  { %421 = vmatpush3.bf16.msra.mxu1 %v465_v10 }
  0x3d   :  { %422 = vmatprep.subr.bf16.mxu1 %v567_v0  ;;  %437 = vmatpush3.bf16.msra.mxu0 %v471_v16 }
  0x3e   :  { %438 = vmatprep.subr.bf16.mxu0 %v567_v0 }
  0x40   :  { %423 = vmatpush3.bf16.msra.mxu1 %v466_v11 }
  0x41   :  { %424 = vmatprep.subr.bf16.mxu1 %v567_v0  ;;  %439 = vmatpush3.bf16.msra.mxu0 %v472_v17 }
  0x42   :  { %440 = vmatprep.subr.bf16.mxu0 %v567_v0 }
  0x44   :  { %425 = vmatpush3.bf16.msra.mxu1 %v467_v12 }
  0x45   :  { %441 = vmatpush3.bf16.msra.mxu0 %v473_v18 }
  0x46   :  { %442 = vmatprep.subr.bf16.mxu0 %v567_v0 }
  0x49   :  { %443 = vmatpush3.bf16.msra.mxu0 %v474_v27 }
  0x4a   :  { %444 = vmatprep.subr.bf16.mxu0 %v567_v0 }
  0x4d   :  { %445 = vmatpush3.bf16.msra.mxu0 %v475_v28 }
  0xef   :  { %v114_v20 = vpop.f32.mrf.mxu0 }
  0xf0   :  { %v115_v21 = vadd.f32 %v359_v19, %v114_v20 }
  0xf1   :  { %v408_v22 = vpop.f32.mrf.mxu0 }
  0xf2   :  { %v120_v23 = vmax.f32 %v115_v21, 0.0 }
  0xf3   :  { %v117_v24 = vpop.f32.mrf.mxu0 }
  0xf4   :  { %v138_v25 = vpack.c.bf16 %v120_v23, %v120_v23 }
  0xf5   :  { %v409_v26 = vpop.f32.mrf.mxu0 }
  0xf6   :  { %427 = vmatmul.mubr.bf16.vlgmr.msra.gmra.mxu1 %v138_v25 }
 0x1b6   :  { %v225_v30 = vpop.f32.mrf.mxu1 }
 0x1b7   :  { %v226_v31 = vadd.f32 %v363_v29, %v225_v30 }
 0x1b8   :  { %v428_v32 = vpop.f32.mrf.mxu1 }
 0x1b9   :  { %v231_v33 = vmax.f32 %v226_v31, 0.0 }
 0x1ba   :  { %v228_v34 = vpop.f32.mrf.mxu1 }
 0x1bb   :  { %v249_v35 = vpack.c.bf16 %v231_v33, %v231_v33 }
 0x1bc   :  { %v429_v36 = vpop.f32.mrf.mxu1 }
 0x1bd   :  { %447 = vmatmul.mubr.bf16.vlgmr.msra.gmra.mxu0 %v249_v35 }
 0x27d   :  { %v336_v38 = vpop.f32.mrf.mxu0 }
 0x27e   :  { %v337_v39 = vadd.f32 %v372_v37, %v336_v38 }
 0x27f   :  { %v448_v40 = vpop.f32.mrf.mxu0 }
 0x280   :  { %342 = vst [vmem:[#allocation8] sm:$0x3] %v337_v39 }
 0x281   :  { %v339_v41 = vpop.f32.mrf.mxu0 }
 0x282   :  { %547 = shalt.err (!%p544_p5)
}
 0x283   :  { %352 = dma.vmem_to_hbm [thread:$0]  %s350_s2, 32, %s629_s3, [#allocation4]   ;;  %v449_v42 = vpop.f32.mrf.mxu0 }
 0x284   :  { %560 = dma.done.wait [#allocation4], 32  }
 0x285   :  { %561 = vsyncadd [#allocation4], 4294967264 }
 0x286   :  { %356 = vsyncpa [#allocation3], 1 }
 0x287   :  { %357 = vsyncpa [#allocation6], 1 }
 0x288   :  { %358 = vsyncpa [#allocation4], 1 }

</bundles_post_ra>
